<compile_context>
chip_gen: v7x
topology: tpu7x:2x2x1
jax: 0.10.0
libtpu: 0.0.40
codegen_flags: <defaults>
</compile_context>

<pallas_src>
import jax
import jax.numpy as jnp
from jax.experimental import pallas as pl
from jax.experimental.pallas import tpu as pltpu


def encoder_kernel(bow_ref, w1t_ref, gamma_ref, beta_ref, w2t_ref, b2_ref,
                   theta_ref, acc_ref):
    k = pl.program_id(0)

    @pl.when(k == 0)
    def _init():
        acc_ref[...] = jnp.zeros_like(acc_ref)

    # Partial matmul over the bow_dim reduction: (B, bk) @ (bk, hid).
    # bf16 MXU inputs (bow tile cast in-kernel; weight stored bf16),
    # f32 accumulation in VMEM scratch.
    acc_ref[...] += jnp.dot(
        bow_ref[...].astype(jnp.bfloat16),
        w1t_ref[...],
        preferred_element_type=jnp.float32,
    )

    @pl.when(k == pl.num_programs(0) - 1)
    def _finalize():
        h = acc_ref[...]

        # BatchNorm1d, training-mode forward: batch mean, biased batch variance.
        mean = jnp.mean(h, axis=0, keepdims=True)
        var = jnp.mean(jnp.square(h - mean), axis=0, keepdims=True)
        scale = gamma_ref[...] * jax.lax.rsqrt(var + 1e-5)  # gamma folded into scale
        h = (h - mean) * scale + beta_ref[...]

        # LeakyReLU(0.1) -- f32 VPU.
        h = jnp.where(h >= 0, h, 0.1 * h)

        # Linear(hid -> n_topic) + bias (bf16 MXU inputs, f32 accumulate).
        logits = jnp.dot(h.astype(jnp.bfloat16), w2t_ref[...],
                         preferred_element_type=jnp.float32) + b2_ref[...]

        # Softmax over topics; exact divide so rows sum to 1 at f32 precision
        # (cost is negligible: n_topic lanes once per call).
        m = jnp.max(logits, axis=1, keepdims=True)
        e = jnp.exp(logits - m)
        theta_ref[...] = e / jnp.sum(e, axis=1, keepdims=True)


def prepare_encoder_params(w1, gamma, beta, w2, b2):
    """One-time conversion to kernel layout.

    Call at parameter-load time (outside the jitted step function) so the
    [in, out] transpose and bf16 cast of the large weight is NOT paid per call.
    """
    hid_dim = w1.shape[0]
    n_topic = w2.shape[0]
    w1t = jnp.asarray(w1, jnp.float32).T.astype(jnp.bfloat16)   # [bow_dim, hid]
    w2t = jnp.asarray(w2, jnp.float32).T.astype(jnp.bfloat16)   # [hid, n_topic]
    gamma2 = jnp.asarray(gamma, jnp.float32).reshape(1, hid_dim)
    beta2 = jnp.asarray(beta, jnp.float32).reshape(1, hid_dim)
    b22 = jnp.asarray(b2, jnp.float32).reshape(1, n_topic)
    return w1t, gamma2, beta2, w2t, b22


def _vmem_budget_bytes():
    """~75% of this generation's physical VMEM (v7x 64 MiB -> 48; v5e/v6e 128 -> 96)."""
    try:
        cap = int(pltpu.get_tpu_info().vmem_capacity_bytes)
        if cap <= 0:
            cap = 64 << 20
    except Exception:
        cap = 64 << 20
    return max(min(cap * 3 // 4, 100 << 20), 16 << 20)


def _pick_block_k(bow_dim, B, hid_dim, n_topic, budget_bytes):
    """Largest lane-aligned K tile fitting the VMEM budget.

    Prefers a single grid step (whole [bow_dim, hid] weight resident) whenever
    the double-buffered stream fits -- at small hid the kernel is otherwise
    per-grid-step-overhead bound, not bandwidth bound.
    """
    def stream_bytes(bk):
        # double-buffered bow tile (f32) + double-buffered w1t tile (bf16)
        return 2 * (B * bk * 4 + bk * hid_dim * 2)

    fixed = (B * hid_dim * 4                      # f32 accumulator scratch
             + 2 * hid_dim * n_topic * 2          # w2t (bf16)
             + 2 * (2 * hid_dim + n_topic) * 4    # gamma / beta / b2
             + 2 * B * n_topic * 4                # theta output block
             + (2 << 20))                         # layout / compiler slack
    avail = max(budget_bytes - fixed, 1 << 20)

    if stream_bytes(bow_dim) <= avail:
        return bow_dim                            # single-step: no K grid
    bk = (bow_dim // 128) * 128
    while bk >= 128:
        if bow_dim % bk == 0 and stream_bytes(bk) <= avail:
            return bk
        bk -= 128
    return bow_dim                                # no aligned divisor; one step


def _valid_block_k(bow_dim, bk):
    return bk == bow_dim or (bow_dim % bk == 0 and bk % 128 == 0)


def encoder_forward(bow, w1t, gamma, beta, w2t, b2, *, block_k=None):
    """bow: [B, bow_dim] f32; params from prepare_encoder_params.

    Returns doc_r = [theta | bow]: [B, n_topic + bow_dim] f32.
    The kernel emits only theta (lane-dense output); the concat with bow is a
    single streaming XLA op in the wrapper, avoiding masked in-kernel stores of
    the (misaligned-by-n_topic) bow slab and keeping VMEM usage tiny.
    """
    bow = jnp.asarray(bow, jnp.float32)
    B, bow_dim = bow.shape
    hid_dim = w1t.shape[1]
    n_topic = w2t.shape[1]

    budget = _vmem_budget_bytes()
    if block_k is not None and _valid_block_k(bow_dim, int(block_k)):
        bk = int(block_k)
    else:
        bk = _pick_block_k(bow_dim, B, hid_dim, n_topic, budget)
    nk = bow_dim // bk

    theta = pl.pallas_call(
        encoder_kernel,
        out_shape=jax.ShapeDtypeStruct((B, n_topic), jnp.float32),
        grid_spec=pltpu.PrefetchScalarGridSpec(
            num_scalar_prefetch=0,
            grid=(nk,),
            in_specs=[
                # bow, K-tiled MXU operand (pipelined with the weight stream).
                pl.BlockSpec((B, bk), lambda k: (0, k)),
                # Big weight streams through VMEM, double-buffered by Pallas
                # (single resident tile when nk == 1).
                pl.BlockSpec((bk, hid_dim), lambda k: (k, 0)),
                pl.BlockSpec((1, hid_dim), lambda k: (0, 0)),        # gamma
                pl.BlockSpec((1, hid_dim), lambda k: (0, 0)),        # beta
                pl.BlockSpec((hid_dim, n_topic), lambda k: (0, 0)),  # w2t
                pl.BlockSpec((1, n_topic), lambda k: (0, 0)),        # b2
            ],
            out_specs=pl.BlockSpec((B, n_topic), lambda k: (0, 0)),
            scratch_shapes=[pltpu.VMEM((B, hid_dim), jnp.float32)],
        ),
        compiler_params=pltpu.CompilerParams(
            # Single grid axis is the reduction over bow_dim.
            dimension_semantics=("arbitrary",),
            vmem_limit_bytes=budget,
        ),
    )(bow, w1t, gamma, beta, w2t, b2)

    # doc_r = [theta | bow]; bow half is an exact f32 pass-through.
    return jnp.concatenate([theta, bow], axis=1)


def _reference_forward(bow, w1, gamma, beta, w2, b2):
    """Pure-JAX f32 reference of the PyTorch Encoder forward (training-mode BN)."""
    h = bow @ w1.T
    mean = h.mean(axis=0, keepdims=True)
    var = ((h - mean) ** 2).mean(axis=0, keepdims=True)
    h = (h - mean) / jnp.sqrt(var + 1e-5) * gamma + beta
    h = jnp.where(h >= 0, h, 0.1 * h)
    logits = h @ w2.T + b2
    theta = jax.nn.softmax(logits, axis=1)
    return jnp.concatenate([theta, bow], axis=1)


if __name__ == "__main__":
    # Small shapes consistent with the module: Encoder(bow_dim, hid_dim, n_topic).
    B, bow_dim, hid_dim, n_topic = 8, 1024, 64, 16

    key = jax.random.PRNGKey(0)
    k_bow, k_w1, k_w2, k_b2 = jax.random.split(key, 4)

    bow = jax.random.uniform(k_bow, (B, bow_dim), jnp.float32)           # bag-of-words input
    w1 = 0.1 * jax.random.normal(k_w1, (hid_dim, bow_dim), jnp.float32)  # Linear1 weight
    gamma = jnp.ones((hid_dim,), jnp.float32)                            # BatchNorm1d weight init
    beta = jnp.zeros((hid_dim,), jnp.float32)                            # BatchNorm1d bias init
    w2 = 0.1 * jax.random.normal(k_w2, (n_topic, hid_dim), jnp.float32)  # Linear2 weight
    b2 = 0.01 * jax.random.normal(k_b2, (n_topic,), jnp.float32)         # Linear2 bias

    # One-time layout/dtype prep (outside the per-step path).
    params = prepare_encoder_params(w1, gamma, beta, w2, b2)

    fwd = jax.jit(encoder_forward, static_argnames=("block_k",))

    # Auto-tiled path: at these shapes the whole weight fits -> single grid step.
    doc_r = jax.block_until_ready(fwd(bow, *params))
    # Forced K-tiled path (exercises the streaming reduction grid) -- must agree.
    doc_r_tiled = jax.block_until_ready(fwd(bow, *params, block_k=256))

    assert doc_r.shape == (B, n_topic + bow_dim)
    # theta rows sum to 1 (exact divide in the finalize).
    assert bool(jnp.allclose(jnp.sum(doc_r[:, :n_topic], axis=1), 1.0, atol=1e-5))
    # bow half of doc_r is an exact f32 pass-through.
    assert bool(jnp.array_equal(doc_r[:, n_topic:], bow))
    # theta matches the pure-f32 reference up to bf16 matmul error.
    ref = _reference_forward(bow, w1, gamma, beta, w2, b2)
    max_err = float(jnp.max(jnp.abs(doc_r[:, :n_topic] - ref[:, :n_topic])))
    assert max_err < 5e-2, f"theta mismatch vs reference: {max_err}"
    # single-step and K-tiled paths agree (same bf16 quantization, f32 accum).
    tile_err = float(jnp.max(jnp.abs(doc_r_tiled - doc_r)))
    assert tile_err < 5e-3, f"tiled/untiled mismatch: {tile_err}"

    print("KERNEL_OK")
</pallas_src>

<mosaic_0001>
module attributes {stable_mosaic.version = 11 : i64} {
  func.func @encoder_kernel(%arg0: i32, %arg1: memref<8x1024xf32, #tpu.memory_space<vmem>>, %arg2: memref<1024x64xbf16, #tpu.memory_space<vmem>>, %arg3: memref<1x64xf32, #tpu.memory_space<vmem>>, %arg4: memref<1x64xf32, #tpu.memory_space<vmem>>, %arg5: memref<64x16xbf16, #tpu.memory_space<vmem>>, %arg6: memref<1x16xf32, #tpu.memory_space<vmem>>, %arg7: memref<8x16xf32, #tpu.memory_space<vmem>>, %arg8: memref<8x64xf32, #tpu.memory_space<vmem>>) attributes {dimension_semantics = [#tpu.dimension_semantics<arbitrary>], iteration_bounds = array<i64: 1>, scalar_prefetch = 0 : i64, scratch_operands = 1 : i64, tpu.core_type = #tpu.core_type<tc>, window_params = [{transform_indices = @transform_0, window_bounds = array<i64: 8, 1024>}, {transform_indices = @transform_1, window_bounds = array<i64: 1024, 64>}, {pipeline_mode = #tpu.pipeline_mode<synchronous>, transform_indices = @transform_2, window_bounds = array<i64: 1, 64>}, {pipeline_mode = #tpu.pipeline_mode<synchronous>, transform_indices = @transform_3, window_bounds = array<i64: 1, 64>}, {pipeline_mode = #tpu.pipeline_mode<synchronous>, transform_indices = @transform_4, window_bounds = array<i64: 64, 16>}, {pipeline_mode = #tpu.pipeline_mode<synchronous>, transform_indices = @transform_5, window_bounds = array<i64: 1, 16>}, {pipeline_mode = #tpu.pipeline_mode<synchronous>, transform_indices = @transform_6, window_bounds = array<i64: 8, 16>}]} {
    %c0_i32 = arith.constant 0 : i32
    %0 = arith.cmpi eq, %arg0, %c0_i32 : i32
    %1 = arith.extui %0 : i1 to i32
    %c0_i32_0 = arith.constant 0 : i32
    %2 = arith.cmpi ne, %1, %c0_i32_0 : i32
    scf.if %2 {
      %cst_10 = arith.constant 0.000000e+00 : f32
      %13 = vector.broadcast %cst_10 : f32 to vector<8x64xf32>
      %c0_11 = arith.constant 0 : index
      %c0_12 = arith.constant 0 : index
      %14 = vector.load %arg8[%c0_11, %c0_12] : memref<8x64xf32, #tpu.memory_space<vmem>>, vector<8x64xf32>
      tpu.vector_store %arg8[%c0_11, %c0_12], %13 {strides = array<i32>} : memref<8x64xf32, #tpu.memory_space<vmem>>, vector<8x64xf32>,
    } else {
    }
    %c0 = arith.constant 0 : index
    %c0_1 = arith.constant 0 : index
    %3 = vector.load %arg8[%c0, %c0_1] : memref<8x64xf32, #tpu.memory_space<vmem>>, vector<8x64xf32>
    %c0_2 = arith.constant 0 : index
    %c0_3 = arith.constant 0 : index
    %4 = vector.load %arg1[%c0_2, %c0_3] : memref<8x1024xf32, #tpu.memory_space<vmem>>, vector<8x1024xf32>
    %5 = arith.truncf %4 : vector<8x1024xf32> to vector<8x1024xbf16>
    %c0_4 = arith.constant 0 : index
    %c0_5 = arith.constant 0 : index
    %6 = vector.load %arg2[%c0_4, %c0_5] : memref<1024x64xbf16, #tpu.memory_space<vmem>>, vector<1024x64xbf16>
    %cst = arith.constant dense<0.000000e+00> : vector<8x64xf32>
    %7 = tpu.matmul %5, %6, %cst {dimension_numbers = #tpu.dot_dimension_numbers<[1], [0], [0], [1], [0, 0, 1, 1], [], []>} : vector<8x1024xbf16>, vector<1024x64xbf16>, vector<8x64xf32> -> vector<8x64xf32>
    %8 = arith.addf %3, %7 : vector<8x64xf32>
    %c0_6 = arith.constant 0 : index
    %c0_7 = arith.constant 0 : index
    %9 = vector.load %arg8[%c0_6, %c0_7] : memref<8x64xf32, #tpu.memory_space<vmem>>, vector<8x64xf32>
    tpu.vector_store %arg8[%c0_6, %c0_7], %8 {strides = array<i32>} : memref<8x64xf32, #tpu.memory_space<vmem>>, vector<8x64xf32>,
    %c0_i32_8 = arith.constant 0 : i32
    %10 = arith.cmpi eq, %arg0, %c0_i32_8 : i32
    %11 = arith.extui %10 : i1 to i32
    %c0_i32_9 = arith.constant 0 : i32
    %12 = arith.cmpi ne, %11, %c0_i32_9 : i32
    scf.if %12 {
      %c0_10 = arith.constant 0 : index
      %c0_11 = arith.constant 0 : index
      %13 = vector.load %arg8[%c0_10, %c0_11] : memref<8x64xf32, #tpu.memory_space<vmem>>, vector<8x64xf32>
      %cst_12 = arith.constant dense<0.000000e+00> : vector<64xf32>
      %14 = vector.multi_reduction <add>, %13, %cst_12 [0] : vector<8x64xf32> to vector<64xf32>
      %15 = vector.shape_cast %14 : vector<64xf32> to vector<1x64xf32>
      %cst_13 = arith.constant 8.000000e+00 : f32
      %16 = vector.broadcast %cst_13 : f32 to vector<1x64xf32>
      %17 = arith.divf %15, %16 : vector<1x64xf32>
      %18 = vector.broadcast %17 : vector<1x64xf32> to vector<8x64xf32>
      %19 = arith.subf %13, %18 : vector<8x64xf32>
      %20 = arith.mulf %19, %19 : vector<8x64xf32>
      %cst_14 = arith.constant dense<0.000000e+00> : vector<64xf32>
      %21 = vector.multi_reduction <add>, %20, %cst_14 [0] : vector<8x64xf32> to vector<64xf32>
      %22 = vector.shape_cast %21 : vector<64xf32> to vector<1x64xf32>
      %cst_15 = arith.constant 8.000000e+00 : f32
      %23 = vector.broadcast %cst_15 : f32 to vector<1x64xf32>
      %24 = arith.divf %22, %23 : vector<1x64xf32>
      %c0_16 = arith.constant 0 : index
      %c0_17 = arith.constant 0 : index
      %25 = vector.load %arg3[%c0_16, %c0_17] : memref<1x64xf32, #tpu.memory_space<vmem>>, vector<1x64xf32>
      %cst_18 = arith.constant 9.99999974E-6 : f32
      %26 = vector.broadcast %cst_18 : f32 to vector<1x64xf32>
      %27 = arith.addf %24, %26 : vector<1x64xf32>
      %28 = math.rsqrt %27 : vector<1x64xf32>
      %29 = arith.mulf %25, %28 : vector<1x64xf32>
      %30 = vector.broadcast %17 : vector<1x64xf32> to vector<8x64xf32>
      %31 = arith.subf %13, %30 : vector<8x64xf32>
      %32 = vector.broadcast %29 : vector<1x64xf32> to vector<8x64xf32>
      %33 = arith.mulf %31, %32 : vector<8x64xf32>
      %c0_19 = arith.constant 0 : index
      %c0_20 = arith.constant 0 : index
      %34 = vector.load %arg4[%c0_19, %c0_20] : memref<1x64xf32, #tpu.memory_space<vmem>>, vector<1x64xf32>
      %35 = vector.broadcast %34 : vector<1x64xf32> to vector<8x64xf32>
      %36 = arith.addf %33, %35 : vector<8x64xf32>
      %cst_21 = arith.constant 0.000000e+00 : f32
      %37 = vector.broadcast %cst_21 : f32 to vector<8x64xf32>
      %38 = arith.cmpf oge, %36, %37 : vector<8x64xf32>
      %cst_22 = arith.constant 1.000000e-01 : f32
      %39 = vector.broadcast %cst_22 : f32 to vector<8x64xf32>
      %40 = arith.mulf %39, %36 : vector<8x64xf32>
      %41 = arith.select %38, %36, %40 : vector<8x64xi1>, vector<8x64xf32>
      %42 = arith.truncf %41 : vector<8x64xf32> to vector<8x64xbf16>
      %c0_23 = arith.constant 0 : index
      %c0_24 = arith.constant 0 : index
      %43 = vector.load %arg5[%c0_23, %c0_24] : memref<64x16xbf16, #tpu.memory_space<vmem>>, vector<64x16xbf16>
      %cst_25 = arith.constant dense<0.000000e+00> : vector<8x16xf32>
      %44 = tpu.matmul %42, %43, %cst_25 {dimension_numbers = #tpu.dot_dimension_numbers<[1], [0], [0], [1], [0, 0, 1, 1], [], []>} : vector<8x64xbf16>, vector<64x16xbf16>, vector<8x16xf32> -> vector<8x16xf32>
      %c0_26 = arith.constant 0 : index
      %c0_27 = arith.constant 0 : index
      %45 = vector.load %arg6[%c0_26, %c0_27] : memref<1x16xf32, #tpu.memory_space<vmem>>, vector<1x16xf32>
      %46 = vector.broadcast %45 : vector<1x16xf32> to vector<8x16xf32>
      %47 = arith.addf %44, %46 : vector<8x16xf32>
      %cst_28 = arith.constant dense<0xFF800000> : vector<8xf32>
      %48 = vector.multi_reduction <maximumf>, %47, %cst_28 [1] : vector<8x16xf32> to vector<8xf32>
      %49 = vector.shape_cast %48 : vector<8xf32> to vector<8x1xf32>
      %50 = vector.broadcast %49 : vector<8x1xf32> to vector<8x16xf32>
      %51 = arith.subf %47, %50 : vector<8x16xf32>
      %52 = math.exp %51 : vector<8x16xf32>
      %cst_29 = arith.constant dense<0.000000e+00> : vector<8xf32>
      %53 = vector.multi_reduction <add>, %52, %cst_29 [1] : vector<8x16xf32> to vector<8xf32>
      %54 = vector.shape_cast %53 : vector<8xf32> to vector<8x1xf32>
      %55 = vector.broadcast %54 : vector<8x1xf32> to vector<8x16xf32>
      %56 = arith.divf %52, %55 : vector<8x16xf32>
      %c0_30 = arith.constant 0 : index
      %c0_31 = arith.constant 0 : index
      %57 = vector.load %arg7[%c0_30, %c0_31] : memref<8x16xf32, #tpu.memory_space<vmem>>, vector<8x16xf32>
      tpu.vector_store %arg7[%c0_30, %c0_31], %56 {strides = array<i32>} : memref<8x16xf32, #tpu.memory_space<vmem>>, vector<8x16xf32>,
    } else {
    }
    return
  }
  func.func @transform_0(%arg0: i32) -> (i32, i32) {
    %c0_i32 = arith.constant 0 : i32
    %c0_i32_0 = arith.constant 0 : i32
    return %c0_i32, %arg0 : i32, i32
  }
  func.func @transform_1(%arg0: i32) -> (i32, i32) {
    %c0_i32 = arith.constant 0 : i32
    %c0_i32_0 = arith.constant 0 : i32
    return %arg0, %c0_i32 : i32, i32
  }
  func.func @transform_2(%arg0: i32) -> (i32, i32) {
    %c0_i32 = arith.constant 0 : i32
    %c0_i32_0 = arith.constant 0 : i32
    %c0_i32_1 = arith.constant 0 : i32
    return %c0_i32, %c0_i32_0 : i32, i32
  }
  func.func @transform_3(%arg0: i32) -> (i32, i32) {
    %c0_i32 = arith.constant 0 : i32
    %c0_i32_0 = arith.constant 0 : i32
    %c0_i32_1 = arith.constant 0 : i32
    return %c0_i32, %c0_i32_0 : i32, i32
  }
  func.func @transform_4(%arg0: i32) -> (i32, i32) {
    %c0_i32 = arith.constant 0 : i32
    %c0_i32_0 = arith.constant 0 : i32
    %c0_i32_1 = arith.constant 0 : i32
    return %c0_i32, %c0_i32_0 : i32, i32
  }
  func.func @transform_5(%arg0: i32) -> (i32, i32) {
    %c0_i32 = arith.constant 0 : i32
    %c0_i32_0 = arith.constant 0 : i32
    %c0_i32_1 = arith.constant 0 : i32
    return %c0_i32, %c0_i32_0 : i32, i32
  }
  func.func @transform_6(%arg0: i32) -> (i32, i32) {
    %c0_i32 = arith.constant 0 : i32
    %c0_i32_0 = arith.constant 0 : i32
    %c0_i32_1 = arith.constant 0 : i32
    return %c0_i32, %c0_i32_0 : i32, i32
  }
}

</mosaic_0001>

<bundles_post_ra>
// kernel: encoder_forward.1
= control target key start
LH: loop header
LB: loop body
LE: loop exit
PB: predicated region body
PF: predicated region fallthrough
CT: control target
= control target key end

     0   :  { %vm28_vm0 = vcmask 523264   ;;  %vm1120_vm1 = vmmov 0   ;;  %vm850_vm3 = vcmask 130048   ;;  %s1404_s1 = inlined_call_operand.vmem [shape: bf16[1024,64], index: 1, kind: input, shape index: {}]   ;;  %s1405_s0 = inlined_call_operand.vmem [shape: f32[8,1024], index: 0, kind: input, shape index: {}]   ;;  %s1406_s4 = inlined_call_operand.vmem [shape: bf16[64,16], index: 4, kind: input, shape index: {}]   ;;  %s1407_s2 = inlined_call_operand.vmem [shape: f32[1,64], index: 2, kind: input, shape index: {}]   ;;  %s1408_s3 = inlined_call_operand.vmem [shape: f32[1,64], index: 3, kind: input, shape index: {}]   ;;  %s1409_s5 = inlined_call_operand.vmem [shape: f32[1,16], index: 5, kind: input, shape index: {}]   ;;  %s1410_s6 = inlined_call_operand.vmem [shape: f32[8,16], index: 6, kind: output, shape index: {}]  }
   0x1   :  { %v1045_v0 = vld [vmem:[%s1404_s1 + $0x40] sm:$0xff]   ;;  %v1049_v4 = vld [vmem:[%s1404_s1 + $0x48] sm:$0xff]   ;;  %v1053_v8 = vld [vmem:[%s1404_s1 + $0x50] sm:$0xff]  }
   0x2   :  { %v1046_v1 = vld [vmem:[%s1404_s1 + $0xc0] sm:$0xff]   ;;  %938 = vmatprep.subr.bf16.mxu0 %v1045_v0  ;;  %v1050_v5 = vld [vmem:[%s1404_s1 + $0xc8] sm:$0xff]   ;;  %v1054_v9 = vld [vmem:[%s1404_s1 + $0xd0] sm:$0xff]  }
   0x3   :  { %v1047_v2 = vld [vmem:[%s1404_s1] sm:$0xff]   ;;  %960 = vmatprep.subr.bf16.mxu1 %v1046_v1  ;;  %v1051_v6 = vld [vmem:[%s1404_s1 + $0x8] sm:$0xff]   ;;  %v1055_v10 = vld [vmem:[%s1404_s1 + $0x10] sm:$0xff]  }
   0x4   :  { %v1048_v3 = vld [vmem:[%s1404_s1 + $0x80] sm:$0xff]   ;;  %939 = vmatpush3.bf16.msra.mxu0 %v1047_v2  ;;  %v1052_v7 = vld [vmem:[%s1404_s1 + $0x88] sm:$0xff]   ;;  %v1056_v11 = vld [vmem:[%s1404_s1 + $0x90] sm:$0xff]  }
   0x5   :  { %961 = vmatpush3.bf16.msra.mxu1 %v1048_v3  ;;  %940 = vmatprep.subr.bf16.mxu0 %v1049_v4  ;;  %v1057_v12 = vld [vmem:[%s1404_s1 + $0x58] sm:$0xff]   ;;  %v1061_v16 = vld [vmem:[%s1404_s1 + $0x60] sm:$0xff]   ;;  %v1065_v20 = vld [vmem:[%s1404_s1 + $0x68] sm:$0xff]  }
   0x6   :  { %962 = vmatprep.subr.bf16.mxu1 %v1050_v5  ;;  %v1058_v13 = vld [vmem:[%s1404_s1 + $0xd8] sm:$0xff]   ;;  %v1062_v17 = vld [vmem:[%s1404_s1 + $0xe0] sm:$0xff]   ;;  %v1066_v21 = vld [vmem:[%s1404_s1 + $0xe8] sm:$0xff]  }
   0x7   :  { %v1059_v14 = vld [vmem:[%s1404_s1 + $0x18] sm:$0xff]   ;;  %v1063_v18 = vld [vmem:[%s1404_s1 + $0x20] sm:$0xff]   ;;  %v1067_v22 = vld [vmem:[%s1404_s1 + $0x28] sm:$0xff]  }
   0x8   :  { %941 = vmatpush3.bf16.msra.mxu0 %v1051_v6  ;;  %v1060_v15 = vld [vmem:[%s1404_s1 + $0x98] sm:$0xff]   ;;  %v1064_v19 = vld [vmem:[%s1404_s1 + $0xa0] sm:$0xff]   ;;  %v1068_v23 = vld [vmem:[%s1404_s1 + $0xa8] sm:$0xff]  }
   0x9   :  { %963 = vmatpush3.bf16.msra.mxu1 %v1052_v7  ;;  %942 = vmatprep.subr.bf16.mxu0 %v1053_v8  ;;  %v1069_v24 = vld [vmem:[%s1404_s1 + $0x70] sm:$0xff]   ;;  %v1073_v28 = vld [vmem:[%s1404_s1 + $0x78] sm:$0xff]   ;;  %v32_v32 = vld [vmem:[%s1405_s0 + $0x8] sm:$0xff] }
   0xa   :  { %964 = vmatprep.subr.bf16.mxu1 %v1054_v9  ;;  %v1070_v25 = vld [vmem:[%s1404_s1 + $0xf0] sm:$0xff]   ;;  %v1074_v29 = vld [vmem:[%s1404_s1 + $0xf8] sm:$0xff]   ;;  %v31_v34 = vld [vmem:[%s1405_s0] sm:$0xff]  ;;  %v40_v35 = vpack.c.bf16 %v32_v32, %v32_v32 }
   0xb   :  { %v1071_v26 = vld [vmem:[%s1404_s1 + $0x30] sm:$0xff]   ;;  %v1075_v30 = vld [vmem:[%s1404_s1 + $0x38] sm:$0xff]   ;;  %v39_v37 = vpack.c.bf16 %v31_v34, %v31_v34  ;;  %v1077_v40 = vld [vmem:[%s1404_s1 + $0x140] sm:$0xff]  }
   0xc   :  { %943 = vmatpush3.bf16.msra.mxu0 %v1055_v10  ;;  %v1072_v27 = vld [vmem:[%s1404_s1 + $0xb0] sm:$0xff]   ;;  %v1076_v31 = vld [vmem:[%s1404_s1 + $0xb8] sm:$0xff]   ;;  %591 = vmatprep.mubr.bf16.mxu0 %v40_v35  ;;  %v1078_v41 = vld [vmem:[%s1404_s1 + $0x1c0] sm:$0xff]  }
   0xd   :  { %965 = vmatpush3.bf16.msra.mxu1 %v1056_v11  ;;  %944 = vmatprep.subr.bf16.mxu0 %v1057_v12  ;;  %v34_v33 = vld [vmem:[%s1405_s0 + $0x18] sm:$0xff]  ;;  %v33_v38 = vld [vmem:[%s1405_s0 + $0x10] sm:$0xff]  ;;  %v1079_v42 = vld [vmem:[%s1404_s1 + $0x100] sm:$0xff]  }
   0xe   :  { %966 = vmatprep.subr.bf16.mxu1 %v1058_v13  ;;  %v42_v36 = vpack.c.bf16 %v34_v33, %v34_v33  ;;  %v41_v39 = vpack.c.bf16 %v33_v38, %v33_v38  ;;  %v1080_v43 = vld [vmem:[%s1404_s1 + $0x180] sm:$0xff]   ;;  %v1081_v44 = vld [vmem:[%s1404_s1 + $0x148] sm:$0xff]   ;;  %v1085_v48 = vld [vmem:[%s1404_s1 + $0x150] sm:$0xff]  }
   0xf   :  { %v1082_v45 = vld [vmem:[%s1404_s1 + $0x1c8] sm:$0xff]   ;;  %v1086_v49 = vld [vmem:[%s1404_s1 + $0x1d0] sm:$0xff]   ;;  %v1089_v52 = vld [vmem:[%s1404_s1 + $0x158] sm:$0xff]  }
  0x10   :  { %945 = vmatpush3.bf16.msra.mxu0 %v1059_v14  ;;  %631 = vmatprep.mubr.bf16.mxu1 %v42_v36  ;;  %v1083_v46 = vld [vmem:[%s1404_s1 + $0x108] sm:$0xff]   ;;  %v1087_v50 = vld [vmem:[%s1404_s1 + $0x110] sm:$0xff]   ;;  %v1090_v53 = vld [vmem:[%s1404_s1 + $0x1d8] sm:$0xff]  }
  0x11   :  { %967 = vmatpush3.bf16.msra.mxu1 %v1060_v15  ;;  %946 = vmatprep.subr.bf16.mxu0 %v1061_v16  ;;  %v1084_v47 = vld [vmem:[%s1404_s1 + $0x188] sm:$0xff]   ;;  %v1088_v51 = vld [vmem:[%s1404_s1 + $0x190] sm:$0xff]   ;;  %v1091_v54 = vld [vmem:[%s1404_s1 + $0x118] sm:$0xff]   ;;  %v1119_v16 = vmov 0.0  }
  0x12   :  { %968 = vmatprep.subr.bf16.mxu1 %v1062_v17  ;;  %v1092_v55 = vld [vmem:[%s1404_s1 + $0x198] sm:$0xff]   ;;  %v1093_v56 = vld [vmem:[%s1404_s1 + $0x160] sm:$0xff]   ;;  %v1097_v60 = vld [vmem:[%s1404_s1 + $0x168] sm:$0xff]   ;;  %29 = vst.msk [vmem:[#allocation2] sm:$0xff] %vm28_vm0, %v1119_v16 }
  0x13   :  { %v1094_v57 = vld [vmem:[%s1404_s1 + $0x1e0] sm:$0xff]   ;;  %v1098_v61 = vld [vmem:[%s1404_s1 + $0x1e8] sm:$0xff]   ;;  %v1101_v0 = vld [vmem:[%s1404_s1 + $0x170] sm:$0xff]  }
  0x14   :  { %947 = vmatpush3.bf16.msra.mxu0 %v1063_v18  ;;  %v1095_v58 = vld [vmem:[%s1404_s1 + $0x120] sm:$0xff]   ;;  %v1099_v62 = vld [vmem:[%s1404_s1 + $0x128] sm:$0xff]   ;;  %v1102_v1 = vld [vmem:[%s1404_s1 + $0x1f0] sm:$0xff]  }
  0x15   :  { %969 = vmatpush3.bf16.msra.mxu1 %v1064_v19  ;;  %948 = vmatprep.subr.bf16.mxu0 %v1065_v20  ;;  %v1096_v59 = vld [vmem:[%s1404_s1 + $0x1a0] sm:$0xff]   ;;  %v1100_v63 = vld [vmem:[%s1404_s1 + $0x1a8] sm:$0xff]   ;;  %v1103_v2 = vld [vmem:[%s1404_s1 + $0x130] sm:$0xff]  }
  0x16   :  { %970 = vmatprep.subr.bf16.mxu1 %v1066_v21  ;;  %v1104_v3 = vld [vmem:[%s1404_s1 + $0x1b0] sm:$0xff]   ;;  %v1105_v4 = vld [vmem:[%s1404_s1 + $0x178] sm:$0xff]   ;;  %v36_v8 = vld [vmem:[%s1405_s0 + $0x28] sm:$0xff] }
  0x17   :  { %v1106_v5 = vld [vmem:[%s1404_s1 + $0x1f8] sm:$0xff]   ;;  %v44_v10 = vpack.c.bf16 %v36_v8, %v36_v8  ;;  %v35_v12 = vld [vmem:[%s1405_s0 + $0x20] sm:$0xff]  ;;  %v37_v13 = vld [vmem:[%s1405_s0 + $0x30] sm:$0xff] }
  0x18   :  { %949 = vmatpush3.bf16.msra.mxu0 %v1067_v22  ;;  %v1107_v6 = vld [vmem:[%s1404_s1 + $0x138] sm:$0xff]   ;;  %v43_v14 = vpack.c.bf16 %v35_v12, %v35_v12  ;;  %v45_v15 = vpack.c.bf16 %v37_v13, %v37_v13  ;;  %v1109_v17 = vld [vmem:[%s1406_s4] sm:$0xff]   ;;  %v1110_v18 = vld [vmem:[%s1406_s4 + $0x8] sm:$0xff]  }
  0x19   :  { %971 = vmatpush3.bf16.msra.mxu1 %v1068_v23  ;;  %950 = vmatprep.subr.bf16.mxu0 %v1069_v24  ;;  %v1108_v7 = vld [vmem:[%s1404_s1 + $0x1b8] sm:$0xff]   ;;  %v1111_v19 = vld [vmem:[%s1406_s4 + $0x10] sm:$0xff]  }
  0x1a   :  { %972 = vmatprep.subr.bf16.mxu1 %v1070_v25  ;;  %v38_v9 = vld [vmem:[%s1405_s0 + $0x38] sm:$0xff] }
  0x1b   :  { %v46_v11 = vpack.c.bf16 %v38_v9, %v38_v9  ;;  %v1112_v20 = vld [vmem:[%s1406_s4 + $0x18] sm:$0xff]   ;;  %v931_v9 = vld [vmem:[%s1408_s3] ss:$0 sm:$0xff] }
  0x1c   :  { %951 = vmatpush3.bf16.msra.mxu0 %v1071_v26 }
  0x1d   :  { %973 = vmatpush3.bf16.msra.mxu1 %v1072_v27  ;;  %952 = vmatprep.subr.bf16.mxu0 %v1073_v28 }
  0x1e   :  { %974 = vmatprep.subr.bf16.mxu1 %v1074_v29 }
  0x20   :  { %953 = vmatpush3.bf16.msra.mxu0 %v1075_v30 }
  0x21   :  { %975 = vmatpush3.bf16.msra.mxu1 %v1076_v31  ;;  %982 = vmatprep.subr.bf16.mxu0 %v1077_v40 }
  0x22   :  { %1004 = vmatprep.subr.bf16.mxu1 %v1078_v41 }
  0x23   :  { %592 = vmatmul.mubr.bf16.vlgmr.msra.gmra.mrb[0].mxu0 %v39_v37 }
  0x24   :  { %632 = vmatmul.mubr.bf16.vlgmr.msra.gmra.mrb[0].mxu1 %v41_v39  ;;  %983 = vmatpush3.bf16.msra.mxu0 %v1079_v42 }
  0x25   :  { %1005 = vmatpush3.bf16.msra.mxu1 %v1080_v43  ;;  %984 = vmatprep.subr.bf16.mxu0 %v1081_v44  ;;  %v30_v43 = vld [vmem:[#allocation2] sm:$0xff] }
  0x26   :  { %1006 = vmatprep.subr.bf16.mxu1 %v1082_v45  ;;  %671 = vmatprep.mubr.bf16.mxu0 %v44_v10 }
  0x27   :  { %711 = vmatprep.mubr.bf16.mxu1 %v46_v11 }
  0x28   :  { %985 = vmatpush3.bf16.msra.mxu0 %v1083_v46 }
  0x29   :  { %1007 = vmatpush3.bf16.msra.mxu1 %v1084_v47  ;;  %986 = vmatprep.subr.bf16.mxu0 %v1085_v48 }
  0x2a   :  { %1008 = vmatprep.subr.bf16.mxu1 %v1086_v49 }
  0x2c   :  { %987 = vmatpush3.bf16.msra.mxu0 %v1087_v50 }
  0x2d   :  { %1009 = vmatpush3.bf16.msra.mxu1 %v1088_v51  ;;  %988 = vmatprep.subr.bf16.mxu0 %v1089_v52 }
  0x2e   :  { %1010 = vmatprep.subr.bf16.mxu1 %v1090_v53 }
  0x30   :  { %989 = vmatpush3.bf16.msra.mxu0 %v1091_v54 }
  0x31   :  { %1011 = vmatpush3.bf16.msra.mxu1 %v1092_v55  ;;  %990 = vmatprep.subr.bf16.mxu0 %v1093_v56 }
  0x32   :  { %1012 = vmatprep.subr.bf16.mxu1 %v1094_v57 }
  0x34   :  { %991 = vmatpush3.bf16.msra.mxu0 %v1095_v58 }
  0x35   :  { %1013 = vmatpush3.bf16.msra.mxu1 %v1096_v59  ;;  %992 = vmatprep.subr.bf16.mxu0 %v1097_v60 }
  0x36   :  { %1014 = vmatprep.subr.bf16.mxu1 %v1098_v61 }
  0x38   :  { %993 = vmatpush3.bf16.msra.mxu0 %v1099_v62 }
  0x39   :  { %1015 = vmatpush3.bf16.msra.mxu1 %v1100_v63  ;;  %994 = vmatprep.subr.bf16.mxu0 %v1101_v0 }
  0x3a   :  { %1016 = vmatprep.subr.bf16.mxu1 %v1102_v1 }
  0x3c   :  { %995 = vmatpush3.bf16.msra.mxu0 %v1103_v2  ;;  %v750_v2 = vlaneseq }
  0x3d   :  { %1017 = vmatpush3.bf16.msra.mxu1 %v1104_v3  ;;  %996 = vmatprep.subr.bf16.mxu0 %v1105_v4  ;;  %v745_v4 = vld [vmem:[%s1407_s2] sm:$0x1] }
  0x3e   :  { %1018 = vmatprep.subr.bf16.mxu1 %v1106_v5  ;;  %v751_v3 = vshrl.u32 %v750_v2, 7 }
  0x40   :  { %997 = vmatpush3.bf16.msra.mxu0 %v1107_v6  ;;  %v752_v5 = vsub.s32 0, %v751_v3 }
  0x41   :  { %1019 = vmatpush3.bf16.msra.mxu1 %v1108_v7  ;;  %1031 = vmatprep.subr.bf16.mxu0 %v1119_v16 }
  0x43   :  { %672 = vmatmul.mubr.bf16.vlgmr.msra.gmra.mrb[4].mxu0 %v43_v14 }
  0x44   :  { %712 = vmatmul.mubr.bf16.vlgmr.msra.gmra.mrb[4].mxu1 %v45_v15  ;;  %1039 = vmatprep.mubr.msk.bf16.mxu0 %vm1120_vm1, %v1119_v16  ;;  %v932_v15 = vld [vmem:[%s1409_s5] ss:$0 sm:$0xff] }
  0x45   :  { %1032 = vmatpush3.bf16.msra.mxu0 %v1109_v17 }
  0x46   :  { %1033 = vmatprep.subr.bf16.mxu0 %v1119_v16 }
  0x49   :  { %1034 = vmatpush3.bf16.msra.mxu0 %v1110_v18 }
  0x4a   :  { %1035 = vmatprep.subr.bf16.mxu0 %v1119_v16 }
  0x4d   :  { %1036 = vmatpush3.bf16.msra.mxu0 %v1111_v19 }
  0x4e   :  { %1037 = vmatprep.subr.bf16.mxu0 %v1119_v16 }
  0x51   :  { %1038 = vmatpush3.bf16.msra.mxu0 %v1112_v20 }
  0xf6   :  { %v954_v21 = vpop.f32.mrb[0].mxu0 }
  0xf7   :  { %v976_v22 = vpop.f32.mrb[0].mxu1  ;;  %v955_v23 = vpop.f32.mrb[1].mxu0 }
  0xf8   :  { %v977_v24 = vpop.f32.mrb[1].mxu1  ;;  %v956_v25 = vadd.f32 %v955_v23, %v954_v21  ;;  %v957_v27 = vpop.f32.mrb[2].mxu0 }
  0xf9   :  { %v978_v26 = vadd.f32 %v977_v24, %v976_v22  ;;  %v979_v28 = vpop.f32.mrb[2].mxu1  ;;  %v958_v29 = vpop.f32.mrb[3].mxu0 }
  0xfa   :  { %v980_v30 = vpop.f32.mrb[3].mxu1 }
  0xfb   :  { %v634_v31 = vadd.f32 %v978_v26, %v956_v25 }
 0x116   :  { %v998_v32 = vpop.f32.mrb[4].mxu0 }
 0x117   :  { %v1020_v33 = vpop.f32.mrb[4].mxu1  ;;  %v999_v34 = vpop.f32.mrb[5].mxu0 }
 0x118   :  { %v1000_v35 = vadd.f32 %v999_v34, %v998_v32  ;;  %v1021_v36 = vpop.f32.mrb[5].mxu1  ;;  %v1001_v37 = vpop.f32.mrb[6].mxu0 }
 0x119   :  { %v1022_v38 = vadd.f32 %v1021_v36, %v1020_v33  ;;  %v1023_v39 = vpop.f32.mrb[6].mxu1  ;;  %v1002_v40 = vpop.f32.mrb[7].mxu0 }
 0x11a   :  { %v674_v41 = vadd.f32 %v1000_v35, %v634_v31  ;;  %v1024_v42 = vpop.f32.mrb[7].mxu1 }
 0x11c   :  { %v714_v44 = vadd.f32 %v1022_v38, %v674_v41 }
 0x11e   :  { %v719_v45 = vadd.f32 %v714_v44, %v30_v43 }
 0x120   :  { %721 = vst.msk [vmem:[#allocation2] sm:$0xff] %vm28_vm0, %v719_v45 }
 0x127   :  { %v725_v46 = vld [vmem:[#allocation2] sm:$0xff] }
 0x128   :  { %v726_v47 = vsel %vm28_vm0, %v725_v46, 0.0 }
 0x129   :  { %v727_v48 = vrot.slane %v726_v47, 4 }
 0x12b   :  { %v728_v49 = vadd.f32 %v727_v48, %v726_v47 }
 0x12d   :  { %v729_v50 = vrot.slane %v728_v49, 2 }
 0x12f   :  { %v730_v51 = vadd.f32 %v729_v50, %v728_v49 }
 0x131   :  { %v731_v52 = vrot.slane %v730_v51, 1 }
 0x133   :  { %v732_v53 = vadd.f32 %v731_v52, %v730_v51 }
 0x135   :  { %v734_v54 = vmul.f32 0.125, %v732_v53 }
 0x137   :  { %v735_v55 = vsub.f32 %v725_v46, %v734_v54 }
 0x139   :  { %v736_v56 = vmul.f32 %v735_v55, %v735_v55 }
 0x13b   :  { %v737_v57 = vsel %vm28_vm0, %v736_v56, 0.0 }
 0x13c   :  { %v738_v58 = vrot.slane %v737_v57, 4 }
 0x13e   :  { %v739_v59 = vadd.f32 %v738_v58, %v737_v57 }
 0x140   :  { %v740_v60 = vrot.slane %v739_v59, 2 }
 0x142   :  { %v741_v61 = vadd.f32 %v740_v60, %v739_v59 }
 0x144   :  { %v742_v62 = vrot.slane %v741_v61, 1 }
 0x146   :  { %v743_v63 = vadd.f32 %v742_v62, %v741_v61 }
 0x148   :  { %v744_v0 = vmul.f32 0.125, %v743_v63 }
 0x14a   :  { %v746_v1 = vadd.f32 1e-05, %v744_v0 }
 0x14c   :  { %1113 = vrsqrt.f32 %v746_v1 }
 0x156   :  { %v1114_v6 = vpop.eup %1113 }
 0x157   :  { %v748_v7 = vmul.f32 %v1114_v6, %v745_v4 }
 0x159   :  { %v753_v8 = vrot.slane %v748_v7, %v752_v5 }
 0x15b   :  { %v755_v10 = vmul.f32 %v753_v8, %v735_v55 }
 0x15d   :  { %v763_v11 = vadd.f32 %v931_v9, %v755_v10 }
 0x15f   :  { %vm764_vm2 = vcmp.ge.f32.partialorder %v763_v11, 0.0  ;;  %v765_v12 = vmul.f32 0.1, %v763_v11 }
 0x161   :  { %v766_v13 = vsel %vm764_vm2, %v763_v11, %v765_v12 }
 0x162   :  { %v767_v14 = vpack.c.bf16 %v766_v13, %v766_v13 }
 0x164   :  { %1040 = vmatmul.mubr.msk.bf16.vlgmr.msra.gmra.mrb[8].mxu0 %vm28_vm0, %v767_v14 }
 0x237   :  { %v844_v16 = vpop.f32.mrb[8].mxu0 }
 0x238   :  { %v845_v17 = vadd.f32 %v932_v15, %v844_v16  ;;  %v1041_v18 = vpop.f32.mrb[9].mxu0 }
 0x239   :  { %v847_v19 = vpop.f32.mrb[10].mxu0 }
 0x23a   :  { %v1042_v20 = vpop.f32.mrb[11].mxu0  ;;  %v851_v21 = vsel %vm850_vm3, %v845_v17, -inf }
 0x23b   :  { %852 = vmax.xlane.f32.xlu0 %v851_v21 }
 0x2c8   :  { %v853_v22 = vpop.xlane.xlu0 %852 }
 0x2c9   :  { %v854_v23 = vsub.f32 %v845_v17, %v853_v22 }
 0x2cb   :  { %v855_v24 = vmul.f32 1.442695, %v854_v23 }
 0x2cd   :  { %1115 = vpow2.f32 %v855_v24 }
 0x2d7   :  { %v1116_v25 = vpop.eup %1115 }
 0x2d8   :  { %v857_v26 = vsel %vm850_vm3, %v1116_v25, 0.0 }
 0x2d9   :  { %858 = vadd.xlane.f32.xlu0 %v857_v26 }
 0x366   :  { %v859_v27 = vpop.xlane.xlu0 %858 }
 0x367   :  { %1117 = vrcp.f32 %v859_v27 }
 0x371   :  { %v1118_v28 = vpop.eup %1117 }
 0x372   :  { %v861_v29 = vmul.f32 %v1118_v28, %v1116_v25 }
 0x374   :  { %862 = vst.msk [vmem:[%s1410_s6] sm:$0xff] %vm850_vm3, %v861_v29 }

</bundles_post_ra>
